<compile_context>
chip_gen: v5e
topology: v5e:2x2
jax: 0.10.0
libtpu: 0.0.40
codegen_flags: <defaults>
</compile_context>

<pallas_src>
from functools import partial

import jax
import jax.numpy as jnp
from jax.experimental import pallas as pl
from jax.experimental.pallas import tpu as pltpu


_VMEM = pl.BlockSpec(memory_space=pltpu.MemorySpace.VMEM)


def _round_up(x, m):
    return (x + m - 1) // m * m


# ------------------------------ Pallas kernel -------------------------------

def incept_v3_2d_kernel(patches_ref, wconv_ref, whead_ref, out_ref, *, inv_hw):
    """Fused INCEPT_V3_2D forward: stem conv+BN+ReLU, global-avg-pool, head."""
    # Conv2d_1a_3x3 as an im2col matmul.  BN scale is folded into the weight
    # rows 0..8 and the BN shift rides lane 9 (patches lane 9 is 1.0), so the
    # only elementwise op left is the ReLU.  f32 throughout (tiny contraction).
    stem = jnp.dot(patches_ref[...], wconv_ref[...],
                   preferred_element_type=jnp.float32)          # (N*HWp, Cp)
    stem = jnp.maximum(stem, 0.0)

    # Global average pool: padded spatial rows are exact zeros, so summing over
    # the padded spatial axis and rescaling by 1/hw in f32 is exact.
    n, lp = out_ref.shape
    cp = whead_ref.shape[0]
    hwp = stem.shape[0] // n
    pooled = jnp.sum(stem.reshape(n, hwp, cp), axis=1) * inv_hw  # (N, Cp) f32

    # Fused linear head: (surrogate backbone C->1000) @ (fc 1000->num_class),
    # pre-multiplied offline into a single (Cp, Lp) weight.
    out_ref[...] = jnp.dot(pooled, whead_ref[...],
                           preferred_element_type=jnp.float32)   # (N, Lp)


# --------------------------- one-time parameter prep ------------------------

def prepare_params(params, num_class, eps=1e-3):
    """Fold BN, fuse the linear head, pad — run ONCE, off the per-call path."""
    C = params["conv1_w"].shape[0]          # 32 stem channels
    K = 9                                   # 3x3 taps
    Cp = _round_up(C, 128)                  # lane-dense stem channels
    Lp = _round_up(num_class, 128)          # lane-dense output

    # Fold BatchNorm2d (inference running stats) into the conv weight / shift.
    inv_std = params["bn_gamma"] / jnp.sqrt(params["bn_var"] + eps)       # (C,)
    wmat = params["conv1_w"].reshape(C, K).T * inv_std[None, :]           # (K, C)
    shift = params["bn_beta"] - params["bn_mean"] * inv_std               # (C,)

    # (K+1, Cp): rows 0..8 = BN-scaled conv taps, row 9 = BN shift (bias lane).
    wconv_p = (jnp.zeros((K + 1, Cp), jnp.float32)
               .at[:K, :C].set(wmat.astype(jnp.float32))
               .at[K, :C].set(shift.astype(jnp.float32)))

    # Fuse the two bias-free linear maps offline (valid: no nonlinearity between
    # the surrogate backbone projection and the final fc).
    whead = params["backbone_w"] @ params["fc_w"].T                       # (C, num_class)
    whead_p = (jnp.zeros((Cp, Lp), jnp.float32)
               .at[:C, :num_class].set(whead.astype(jnp.float32)))

    return {"wconv_p": wconv_p, "whead_p": whead_p}


# ------------------------------- Forward pass -------------------------------

@partial(jax.jit, static_argnames=("num_class",))
def incept_v3_2d_forward(x, wconv_p, whead_p, *, num_class):
    N, _, H, W = x.shape
    k, stride = 3, 2
    Ho = (H - k) // stride + 1
    Wo = (W - k) // stride + 1
    hw = Ho * Wo
    hwp = _round_up(hw, 8)                  # sublane-aligned per-sample rows
    Ktot = k * k + 1                        # 9 taps + bias lane
    Cp = wconv_p.shape[1]
    Lp = whead_p.shape[1]

    # im2col (x-dependent indexing glue; the matmul itself runs in the kernel).
    xf = x[:, 0].astype(jnp.float32)                                    # (N, H, W)
    cols = [xf[:, i:i + stride * Ho:stride, j:j + stride * Wo:stride]
            for i in range(k) for j in range(k)]
    taps = jnp.stack(cols, axis=-1).reshape(N, hw, k * k)               # (N, hw, 9)
    bias_lane = jnp.ones((N, hw, 1), jnp.float32)                       # BN shift lane
    patches = jnp.concatenate([taps, bias_lane], axis=-1)               # (N, hw, 10)
    patches_p = (jnp.zeros((N, hwp, Ktot), jnp.float32)
                 .at[:, :hw, :].set(patches)
                 .reshape(N * hwp, Ktot))                               # (N*hwp, 10)

    kernel = partial(incept_v3_2d_kernel, inv_hw=1.0 / hw)
    flops = 2 * (N * hwp * Ktot * Cp + N * Cp * Lp)
    bytes_acc = 4 * (patches_p.size + wconv_p.size + whead_p.size + N * Lp)

    out_p = pl.pallas_call(
        kernel,
        out_shape=jax.ShapeDtypeStruct((N, Lp), jnp.float32),
        in_specs=[_VMEM, _VMEM, _VMEM],
        out_specs=_VMEM,
        cost_estimate=pl.CostEstimate(flops=flops, transcendentals=0,
                                      bytes_accessed=bytes_acc),
    )(patches_p, wconv_p, whead_p)

    logits = out_p[:, :num_class]
    # forward(): `out = fc(out) if len(out) > 3 else fc(out[0])`.
    # fc is linear and bias-free, so fc(out[0]) == fc(out)[0].
    return logits if N > 3 else logits[0]


# ---------------------------------- main ------------------------------------

if __name__ == "__main__":
    key = jax.random.PRNGKey(0)
    ks = jax.random.split(key, 4)

    N, H, W = 4, 32, 32
    num_class = 10
    stem_c, fc_input = 32, 1000      # inception Conv2d_1a_3x3 width / fc.out_features

    x = jax.random.normal(ks[0], (N, 1, H, W), jnp.float32)

    # First conv: the module sums the pretrained 3-channel weight over dim=1
    # (first_conv_weight.sum(dim=1, keepdim=True)).  Random stand-in, same
    # construction, since the torch.hub checkpoint cannot be fetched in-script.
    w3 = jax.random.normal(ks[1], (stem_c, 3, 3, 3), jnp.float32) * 0.1
    params = {
        "conv1_w": w3.sum(axis=1, keepdims=True),          # (32, 1, 3, 3)
        # BatchNorm2d(32, eps=1e-3) running stats (PyTorch defaults).
        "bn_gamma": jnp.ones((stem_c,), jnp.float32),
        "bn_beta": jnp.zeros((stem_c,), jnp.float32),
        "bn_mean": jnp.zeros((stem_c,), jnp.float32),
        "bn_var": jnp.ones((stem_c,), jnp.float32),
        # TODO(synk): pretrained inception_v3 Mixed/aux blocks + its fc(2048->1000)
        # cannot be reproduced in-script; deterministic linear surrogate (global
        # average pool + linear to the 1000-d inception output width) stands in.
        "backbone_w": jax.random.normal(ks[2], (stem_c, fc_input), jnp.float32) * 0.05,
        # self.fc = Linear(fc_input=1000, num_class, bias=False); PyTorch (out, in).
        "fc_w": jax.random.normal(ks[3], (num_class, fc_input), jnp.float32) * 0.03,
    }

    prepped = prepare_params(params, num_class)   # one-time weight prep (hoisted)
    out = incept_v3_2d_forward(x, prepped["wconv_p"], prepped["whead_p"],
                               num_class=num_class)
    jax.block_until_ready(out)
    assert out.shape == (N, num_class)
    assert bool(jnp.all(jnp.isfinite(out)))
    print("KERNEL_OK")
</pallas_src>

<mosaic_0001>
module attributes {stable_mosaic.version = 11 : i64} {
  func.func @incept_v3_2d_kernel(%arg0: memref<928x10xf32, #tpu.memory_space<vmem>>, %arg1: memref<10x128xf32, #tpu.memory_space<vmem>>, %arg2: memref<128x128xf32, #tpu.memory_space<vmem>>, %arg3: memref<4x128xf32, #tpu.memory_space<vmem>>) attributes {dimension_semantics = [], scalar_prefetch = 0 : i64, scratch_operands = 0 : i64, tpu.core_type = #tpu.core_type<tc>} {
    %c0 = arith.constant 0 : index
    %c0_0 = arith.constant 0 : index
    %0 = vector.load %arg0[%c0, %c0_0] : memref<928x10xf32, #tpu.memory_space<vmem>>, vector<928x10xf32>
    %c0_1 = arith.constant 0 : index
    %c0_2 = arith.constant 0 : index
    %1 = vector.load %arg1[%c0_1, %c0_2] : memref<10x128xf32, #tpu.memory_space<vmem>>, vector<10x128xf32>
    %cst = arith.constant dense<0.000000e+00> : vector<928x128xf32>
    %2 = tpu.matmul %0, %1, %cst {dimension_numbers = #tpu.dot_dimension_numbers<[1], [0], [0], [1], [0, 0, 1, 1], [], []>} : vector<928x10xf32>, vector<10x128xf32>, vector<928x128xf32> -> vector<928x128xf32>
    %cst_3 = arith.constant 0.000000e+00 : f32
    %3 = vector.broadcast %cst_3 : f32 to vector<928x128xf32>
    %4 = arith.maximumf %2, %3 : vector<928x128xf32>
    %5 = vector.shape_cast %4 : vector<928x128xf32> to vector<4x232x128xf32>
    %cst_4 = arith.constant dense<0.000000e+00> : vector<4x128xf32>
    %6 = vector.multi_reduction <add>, %5, %cst_4 [1] : vector<4x232x128xf32> to vector<4x128xf32>
    %cst_5 = arith.constant 0.00444444455 : f32
    %7 = vector.broadcast %cst_5 : f32 to vector<4x128xf32>
    %8 = arith.mulf %6, %7 : vector<4x128xf32>
    %c0_6 = arith.constant 0 : index
    %c0_7 = arith.constant 0 : index
    %9 = vector.load %arg2[%c0_6, %c0_7] : memref<128x128xf32, #tpu.memory_space<vmem>>, vector<128x128xf32>
    %cst_8 = arith.constant dense<0.000000e+00> : vector<4x128xf32>
    %10 = tpu.matmul %8, %9, %cst_8 {dimension_numbers = #tpu.dot_dimension_numbers<[1], [0], [0], [1], [0, 0, 1, 1], [], []>} : vector<4x128xf32>, vector<128x128xf32>, vector<4x128xf32> -> vector<4x128xf32>
    %c0_9 = arith.constant 0 : index
    %c0_10 = arith.constant 0 : index
    %11 = vector.load %arg3[%c0_9, %c0_10] : memref<4x128xf32, #tpu.memory_space<vmem>>, vector<4x128xf32>
    tpu.vector_store %arg3[%c0_9, %c0_10], %10 {strides = array<i32>} : memref<4x128xf32, #tpu.memory_space<vmem>>, vector<4x128xf32>,
    return
  }
}

</mosaic_0001>

<bundles_post_ra>
// kernel: incept_v3_2d_forward.1
= control target key start
LH: loop header
LB: loop body
LE: loop exit
PB: predicated region body
PF: predicated region fallthrough
CT: control target
= control target key end

     0   :  { %vm482_vm0 = vcmask 1041408   ;;  %vm133_vm1 = vcmask 80896   ;;  %s1987_s0 = inlined_call_operand.vmem [shape: f32[928,10], index: 0, kind: input, shape index: {}]   ;;  %s1988_s1 = inlined_call_operand.vmem [shape: f32[10,128], index: 1, kind: input, shape index: {}]   ;;  %s1989_s2 = inlined_call_operand.vmem [shape: f32[128,128], index: 2, kind: input, shape index: {}]   ;;  %s1990_s3 = inlined_call_operand.hbm [shape: f32[4,128], index: 3, kind: output, shape index: {}]  }
   0x1   :  { %v132_v0 = vld [vmem:[%s1988_s1 + $0x8] sm:$0x3]  ;;  %v131_v1 = vld [vmem:[%s1988_s1] sm:$0xff]  ;;  %v70_v3 = vld [vmem:[%s1987_s0 + $0x1b8] sm:$0xff] }
   0x2   :  { %1171 = vmatpush.msk.msra.mxu0 %vm482_vm0, %v132_v0  ;;  %1289 = vmatpush.msk.msra.mxu2 %vm482_vm0, %v132_v0  ;;  %v15_v2 = vld [vmem:[%s1987_s0] sm:$0xff]  ;;  %v101_v4 = vld [vmem:[%s1987_s0 + $0x2b0] sm:$0xff] }
   0x3   :  { %1290 = vmatpush.msk.msra.mxu3 %vm482_vm0, %v132_v0  ;;  %1288 = vmatpush.msk.msra.mxu1 %vm482_vm0, %v132_v0 }
   0x4   :  { %501 = vmatpush.msra.mxu0 %v131_v1  ;;  %1292 = vmatpush.msra.mxu2 %v131_v1 }
   0x5   :  { %1293 = vmatpush.msra.mxu3 %v131_v1  ;;  %1172 = vmatmul.msk.f32.vlgmr.msra.gmra.mxu0 %vm133_vm1, %v15_v2 }
   0x6   :  { %1227 = vmatmul.msk.f32.vlgmr.msra.gmra.mxu2 %vm133_vm1, %v70_v3  ;;  %1258 = vmatmul.msk.f32.vlgmr.msra.gmra.mxu3 %vm133_vm1, %v101_v4 }
   0x7   :  { %1291 = vmatpush.msra.mxu1 %v131_v1 }
   0x8   :  { %8 = vsyncpa [#allocation3], 0  ;;  %v16_v5 = vld [vmem:[%s1987_s0 + $0x8] sm:$0xff]  ;;  %v71_v6 = vld [vmem:[%s1987_s0 + $0x1c0] sm:$0xff]  ;;  %vm1127_vm2 = vcmask 1041409   ;;  %vm1129_vm3 = vcmask 1042434  }
   0x9   :  { %v102_v7 = vld [vmem:[%s1987_s0 + $0x2b8] sm:$0xff]  ;;  %v17_v8 = vld [vmem:[%s1987_s0 + $0x10] sm:$0xff]  ;;  %v72_v9 = vld [vmem:[%s1987_s0 + $0x1c8] sm:$0xff]  ;;  %vm1131_vm4 = vcmask 1043459   ;;  %s1162_s29 = sshll.u32 %s1990_s3, 4  ;;  %s1163_s29 = int_to_ptr.hbm [resolvable:$true] %s1162_s29 }
   0xa   :  { %v103_v10 = vld [vmem:[%s1987_s0 + $0x2c0] sm:$0xff]  ;;  %v18_v11 = vld [vmem:[%s1987_s0 + $0x18] sm:$0xff]  ;;  %v73_v12 = vld [vmem:[%s1987_s0 + $0x1d0] sm:$0xff] }
   0xb   :  { %v104_v13 = vld [vmem:[%s1987_s0 + $0x2c8] sm:$0xff]  ;;  %v19_v14 = vld [vmem:[%s1987_s0 + $0x20] sm:$0xff]  ;;  %v74_v15 = vld [vmem:[%s1987_s0 + $0x1d8] sm:$0xff] }
   0xc   :  { %v105_v16 = vld [vmem:[%s1987_s0 + $0x2d0] sm:$0xff]  ;;  %v20_v17 = vld [vmem:[%s1987_s0 + $0x28] sm:$0xff]  ;;  %v75_v18 = vld [vmem:[%s1987_s0 + $0x1e0] sm:$0xff] }
   0xd   :  { %1173 = vmatmul.msk.f32.gmra.mxu0 %vm133_vm1, %v16_v5  ;;  %v106_v19 = vld [vmem:[%s1987_s0 + $0x2d8] sm:$0xff]  ;;  %v21_v20 = vld [vmem:[%s1987_s0 + $0x30] sm:$0xff]  ;;  %v76_v21 = vld [vmem:[%s1987_s0 + $0x1e8] sm:$0xff] }
   0xe   :  { %1228 = vmatmul.msk.f32.gmra.mxu2 %vm133_vm1, %v71_v6  ;;  %1259 = vmatmul.msk.f32.gmra.mxu3 %vm133_vm1, %v102_v7  ;;  %v107_v22 = vld [vmem:[%s1987_s0 + $0x2e0] sm:$0xff]  ;;  %v22_v23 = vld [vmem:[%s1987_s0 + $0x38] sm:$0xff]  ;;  %v77_v24 = vld [vmem:[%s1987_s0 + $0x1f0] sm:$0xff] }
   0xf   :  { %v108_v25 = vld [vmem:[%s1987_s0 + $0x2e8] sm:$0xff]  ;;  %v45_v26 = vld [vmem:[%s1987_s0 + $0xf0] sm:$0xff]  ;;  %v23_v27 = vld [vmem:[%s1987_s0 + $0x40] sm:$0xff] }
  0x10   :  { %1202 = vmatmul.msk.f32.vlgmr.msra.gmra.mxu1 %vm133_vm1, %v45_v26  ;;  %v78_v28 = vld [vmem:[%s1987_s0 + $0x1f8] sm:$0xff]  ;;  %v109_v29 = vld [vmem:[%s1987_s0 + $0x2f0] sm:$0xff]  ;;  %v24_v31 = vld [vmem:[%s1987_s0 + $0x48] sm:$0xff] }
  0x11   :  { %v46_v30 = vld [vmem:[%s1987_s0 + $0xf8] sm:$0xff]  ;;  %v79_v32 = vld [vmem:[%s1987_s0 + $0x200] sm:$0xff]  ;;  %v25_v35 = vld [vmem:[%s1987_s0 + $0x50] sm:$0xff] }
  0x12   :  { %v110_v33 = vld [vmem:[%s1987_s0 + $0x2f8] sm:$0xff]  ;;  %v47_v34 = vld [vmem:[%s1987_s0 + $0x100] sm:$0xff]  ;;  %v80_v36 = vld [vmem:[%s1987_s0 + $0x208] sm:$0xff] }
  0x13   :  { %v111_v37 = vld [vmem:[%s1987_s0 + $0x300] sm:$0xff]  ;;  %v48_v38 = vld [vmem:[%s1987_s0 + $0x108] sm:$0xff]  ;;  %v26_v39 = vld [vmem:[%s1987_s0 + $0x58] sm:$0xff] }
  0x14   :  { %v81_v40 = vld [vmem:[%s1987_s0 + $0x210] sm:$0xff]  ;;  %v112_v41 = vld [vmem:[%s1987_s0 + $0x308] sm:$0xff]  ;;  %v27_v43 = vld [vmem:[%s1987_s0 + $0x60] sm:$0xff] }
  0x15   :  { %1174 = vmatmul.msk.f32.gmra.mxu0 %vm133_vm1, %v17_v8  ;;  %v49_v42 = vld [vmem:[%s1987_s0 + $0x110] sm:$0xff]  ;;  %v82_v44 = vld [vmem:[%s1987_s0 + $0x218] sm:$0xff]  ;;  %v28_v47 = vld [vmem:[%s1987_s0 + $0x68] sm:$0xff] }
  0x16   :  { %1229 = vmatmul.msk.f32.gmra.mxu2 %vm133_vm1, %v72_v9  ;;  %1260 = vmatmul.msk.f32.gmra.mxu3 %vm133_vm1, %v103_v10  ;;  %v113_v45 = vld [vmem:[%s1987_s0 + $0x310] sm:$0xff]  ;;  %v50_v46 = vld [vmem:[%s1987_s0 + $0x118] sm:$0xff]  ;;  %v83_v48 = vld [vmem:[%s1987_s0 + $0x220] sm:$0xff] }
  0x17   :  { %v114_v49 = vld [vmem:[%s1987_s0 + $0x318] sm:$0xff]  ;;  %v51_v50 = vld [vmem:[%s1987_s0 + $0x120] sm:$0xff]  ;;  %v29_v51 = vld [vmem:[%s1987_s0 + $0x70] sm:$0xff] }
  0x18   :  { %1203 = vmatmul.msk.f32.gmra.mxu1 %vm133_vm1, %v46_v30  ;;  %v84_v52 = vld [vmem:[%s1987_s0 + $0x228] sm:$0xff]  ;;  %v115_v53 = vld [vmem:[%s1987_s0 + $0x320] sm:$0xff]  ;;  %v30_v55 = vld [vmem:[%s1987_s0 + $0x78] sm:$0xff] }
  0x19   :  { %v52_v54 = vld [vmem:[%s1987_s0 + $0x128] sm:$0xff]  ;;  %v85_v56 = vld [vmem:[%s1987_s0 + $0x230] sm:$0xff]  ;;  %v31_v60 = vld [vmem:[%s1987_s0 + $0x80] sm:$0xff] }
  0x1a   :  { %v116_v57 = vld [vmem:[%s1987_s0 + $0x328] sm:$0xff]  ;;  %v53_v58 = vld [vmem:[%s1987_s0 + $0x130] sm:$0xff]  ;;  %v86_v61 = vld [vmem:[%s1987_s0 + $0x238] sm:$0xff] }
  0x1b   :  { %v117_v62 = vld [vmem:[%s1987_s0 + $0x330] sm:$0xff]  ;;  %v54_v63 = vld [vmem:[%s1987_s0 + $0x138] sm:$0xff]  ;;  %v32_v3 = vld [vmem:[%s1987_s0 + $0x88] sm:$0xff] }
  0x1c   :  { %v87_v4 = vld [vmem:[%s1987_s0 + $0x240] sm:$0xff]  ;;  %v118_v5 = vld [vmem:[%s1987_s0 + $0x338] sm:$0xff]  ;;  %v33_v10 = vld [vmem:[%s1987_s0 + $0x90] sm:$0xff] }
  0x1d   :  { %1175 = vmatmul.msk.f32.gmra.mxu0 %vm133_vm1, %v18_v11  ;;  %v55_v6 = vld [vmem:[%s1987_s0 + $0x140] sm:$0xff]  ;;  %v88_v11 = vld [vmem:[%s1987_s0 + $0x248] sm:$0xff]  ;;  %v121_v30 = vld [vmem:[%s1987_s0 + $0x350] sm:$0xff] }
  0x1e   :  { %1230 = vmatmul.msk.f32.gmra.mxu2 %vm133_vm1, %v73_v12  ;;  %1261 = vmatmul.msk.f32.gmra.mxu3 %vm133_vm1, %v104_v13  ;;  %v119_v12 = vld [vmem:[%s1987_s0 + $0x340] sm:$0xff]  ;;  %v56_v13 = vld [vmem:[%s1987_s0 + $0x148] sm:$0xff] }
  0x20   :  { %1204 = vmatmul.msk.f32.gmra.mxu1 %vm133_vm1, %v47_v34 }
  0x25   :  { %1176 = vmatmul.msk.f32.gmra.mxu0 %vm133_vm1, %v19_v14 }
  0x26   :  { %1231 = vmatmul.msk.f32.gmra.mxu2 %vm133_vm1, %v74_v15  ;;  %1262 = vmatmul.msk.f32.gmra.mxu3 %vm133_vm1, %v105_v16 }
  0x28   :  { %1205 = vmatmul.msk.f32.gmra.mxu1 %vm133_vm1, %v48_v38 }
  0x2d   :  { %1177 = vmatmul.msk.f32.gmra.mxu0 %vm133_vm1, %v20_v17 }
  0x2e   :  { %1232 = vmatmul.msk.f32.gmra.mxu2 %vm133_vm1, %v75_v18  ;;  %1263 = vmatmul.msk.f32.gmra.mxu3 %vm133_vm1, %v106_v19  ;;  %v34_v19 = vld [vmem:[%s1987_s0 + $0x98] sm:$0xff] }
  0x30   :  { %1206 = vmatmul.msk.f32.gmra.mxu1 %vm133_vm1, %v49_v42 }
  0x35   :  { %1178 = vmatmul.msk.f32.gmra.mxu0 %vm133_vm1, %v21_v20  ;;  %v89_v20 = vld [vmem:[%s1987_s0 + $0x250] sm:$0xff] }
  0x36   :  { %1233 = vmatmul.msk.f32.gmra.mxu2 %vm133_vm1, %v76_v21  ;;  %1264 = vmatmul.msk.f32.gmra.mxu3 %vm133_vm1, %v107_v22  ;;  %v120_v21 = vld [vmem:[%s1987_s0 + $0x348] sm:$0xff] }
  0x38   :  { %1207 = vmatmul.msk.f32.gmra.mxu1 %vm133_vm1, %v50_v46 }
  0x3d   :  { %1179 = vmatmul.msk.f32.gmra.mxu0 %vm133_vm1, %v22_v23  ;;  %v57_v23 = vld [vmem:[%s1987_s0 + $0x150] sm:$0xff] }
  0x3e   :  { %1234 = vmatmul.msk.f32.gmra.mxu2 %vm133_vm1, %v77_v24  ;;  %1265 = vmatmul.msk.f32.gmra.mxu3 %vm133_vm1, %v108_v25 }
  0x40   :  { %1208 = vmatmul.msk.f32.gmra.mxu1 %vm133_vm1, %v51_v50 }
  0x45   :  { %1180 = vmatmul.msk.f32.gmra.mxu0 %vm133_vm1, %v23_v27 }
  0x46   :  { %1235 = vmatmul.msk.f32.gmra.mxu2 %vm133_vm1, %v78_v28  ;;  %1266 = vmatmul.msk.f32.gmra.mxu3 %vm133_vm1, %v109_v29  ;;  %v35_v28 = vld [vmem:[%s1987_s0 + $0xa0] sm:$0xff]  ;;  %v90_v29 = vld [vmem:[%s1987_s0 + $0x258] sm:$0xff] }
  0x48   :  { %1209 = vmatmul.msk.f32.gmra.mxu1 %vm133_vm1, %v52_v54 }
  0x4d   :  { %1181 = vmatmul.msk.f32.gmra.mxu0 %vm133_vm1, %v24_v31 }
  0x4e   :  { %1236 = vmatmul.msk.f32.gmra.mxu2 %vm133_vm1, %v79_v32  ;;  %1267 = vmatmul.msk.f32.gmra.mxu3 %vm133_vm1, %v110_v33  ;;  %v58_v32 = vld [vmem:[%s1987_s0 + $0x158] sm:$0xff] }
  0x50   :  { %1210 = vmatmul.msk.f32.gmra.mxu1 %vm133_vm1, %v53_v58  ;;  %v92_v58 = vld [vmem:[%s1987_s0 + $0x268] sm:$0xff] }
  0x55   :  { %1182 = vmatmul.msk.f32.gmra.mxu0 %vm133_vm1, %v25_v35 }
  0x56   :  { %1237 = vmatmul.msk.f32.gmra.mxu2 %vm133_vm1, %v80_v36  ;;  %1268 = vmatmul.msk.f32.gmra.mxu3 %vm133_vm1, %v111_v37 }
  0x58   :  { %1211 = vmatmul.msk.f32.gmra.mxu1 %vm133_vm1, %v54_v63 }
  0x5d   :  { %1183 = vmatmul.msk.f32.gmra.mxu0 %vm133_vm1, %v26_v39  ;;  %v36_v39 = vld [vmem:[%s1987_s0 + $0xa8] sm:$0xff] }
  0x5e   :  { %1238 = vmatmul.msk.f32.gmra.mxu2 %vm133_vm1, %v81_v40  ;;  %1269 = vmatmul.msk.f32.gmra.mxu3 %vm133_vm1, %v112_v41  ;;  %v91_v40 = vld [vmem:[%s1987_s0 + $0x260] sm:$0xff]  ;;  %v122_v41 = vld [vmem:[%s1987_s0 + $0x358] sm:$0xff] }
  0x60   :  { %1212 = vmatmul.msk.f32.gmra.mxu1 %vm133_vm1, %v55_v6 }
  0x65   :  { %1184 = vmatmul.msk.f32.gmra.mxu0 %vm133_vm1, %v27_v43 }
  0x66   :  { %1239 = vmatmul.msk.f32.gmra.mxu2 %vm133_vm1, %v82_v44  ;;  %1270 = vmatmul.msk.f32.gmra.mxu3 %vm133_vm1, %v113_v45  ;;  %v59_v45 = vld [vmem:[%s1987_s0 + $0x160] sm:$0xff] }
  0x68   :  { %1213 = vmatmul.msk.f32.gmra.mxu1 %vm133_vm1, %v56_v13 }
  0x6d   :  { %1185 = vmatmul.msk.f32.gmra.mxu0 %vm133_vm1, %v28_v47 }
  0x6e   :  { %1240 = vmatmul.msk.f32.gmra.mxu2 %vm133_vm1, %v83_v48  ;;  %1271 = vmatmul.msk.f32.gmra.mxu3 %vm133_vm1, %v114_v49 }
  0x70   :  { %1214 = vmatmul.msk.f32.gmra.mxu1 %vm133_vm1, %v57_v23 }
  0x75   :  { %1186 = vmatmul.msk.f32.gmra.mxu0 %vm133_vm1, %v29_v51 }
  0x76   :  { %1241 = vmatmul.msk.f32.gmra.mxu2 %vm133_vm1, %v84_v52  ;;  %1272 = vmatmul.msk.f32.gmra.mxu3 %vm133_vm1, %v115_v53 }
  0x78   :  { %1215 = vmatmul.msk.f32.gmra.mxu1 %vm133_vm1, %v58_v32 }
  0x7d   :  { %1187 = vmatmul.msk.f32.gmra.mxu0 %vm133_vm1, %v30_v55  ;;  %v37_v55 = vld [vmem:[%s1987_s0 + $0xb0] sm:$0xff] }
  0x7e   :  { %1242 = vmatmul.msk.f32.gmra.mxu2 %vm133_vm1, %v85_v56  ;;  %1273 = vmatmul.msk.f32.gmra.mxu3 %vm133_vm1, %v116_v57 }
  0x80   :  { %1216 = vmatmul.msk.f32.gmra.mxu1 %vm133_vm1, %v59_v45  ;;  %v126_v45 = vld [vmem:[%s1987_s0 + $0x378] sm:$0xff] }
  0x82   :  { %v1576_v59 = vpop.f32.mrf.mxu0 }
  0x83   :  { %v851_v46 = vmax.f32 %v1576_v59, 0.0  ;;  %v123_v59 = vld [vmem:[%s1987_s0 + $0x360] sm:$0xff] }
  0x85   :  { %1188 = vmatmul.msk.f32.gmra.mxu0 %vm133_vm1, %v31_v60 }
  0x86   :  { %1243 = vmatmul.msk.f32.gmra.mxu2 %vm133_vm1, %v86_v61  ;;  %1274 = vmatmul.msk.f32.gmra.mxu3 %vm133_vm1, %v117_v62 }
  0x89   :  { %v1594_v0 = vpop.f32.mrf.mxu2  ;;  %v1596_v1 = vpop.f32.mrf.mxu3 }
  0x8a   :  { %v1598_v2 = vpop.f32.mrf.mxu0 }
  0x8b   :  { %v852_v44 = vmax.f32 %v1598_v2, 0.0  ;;  %v60_v2 = vld [vmem:[%s1987_s0 + $0x168] sm:$0xff] }
  0x8c   :  { %1217 = vmatmul.msk.f32.gmra.mxu1 %vm133_vm1, %v60_v2 }
  0x8d   :  { %1189 = vmatmul.msk.f32.gmra.mxu0 %vm133_vm1, %v32_v3  ;;  %v967_v48 = vadd.f32 %v852_v44, %v851_v46  ;;  %v95_v44 = vld [vmem:[%s1987_s0 + $0x280] sm:$0xff] }
  0x8e   :  { %1244 = vmatmul.msk.f32.gmra.mxu2 %vm133_vm1, %v87_v4  ;;  %1275 = vmatmul.msk.f32.gmra.mxu3 %vm133_vm1, %v118_v5 }
  0x91   :  { %v1616_v7 = vpop.f32.mrf.mxu2  ;;  %v764_v8 = vpop.f32.mrf.mxu3 }
  0x92   :  { %v1618_v9 = vpop.f32.mrf.mxu0  ;;  %v938_v14 = vmax.f32 %v764_v8, 0.0 }
  0x93   :  { %v853_v47 = vmax.f32 %v1618_v9, 0.0 }
  0x95   :  { %1190 = vmatmul.msk.f32.gmra.mxu0 %vm133_vm1, %v33_v10  ;;  %v968_v56 = vadd.f32 %v967_v48, %v853_v47 }
  0x96   :  { %1245 = vmatmul.msk.f32.gmra.mxu2 %vm133_vm1, %v88_v11  ;;  %1276 = vmatmul.msk.f32.gmra.mxu3 %vm133_vm1, %v119_v12  ;;  %v38_v12 = vld [vmem:[%s1987_s0 + $0xb8] sm:$0xff] }
  0x99   :  { %v1636_v15 = vpop.f32.mrf.mxu2  ;;  %v767_v16 = vpop.f32.mrf.mxu3 }
  0x9a   :  { %v939_v17 = vmax.f32 %v767_v16, 0.0  ;;  %v512_v18 = vpop.f32.mrf.mxu0  ;;  %v93_v16 = vld [vmem:[%s1987_s0 + $0x270] sm:$0xff] }
  0x9b   :  { %v854_v49 = vmax.f32 %v512_v18, 0.0 }
  0x9c   :  { %v1069_v22 = vadd.f32 %v939_v17, %v938_v14  ;;  %v124_v17 = vld [vmem:[%s1987_s0 + $0x368] sm:$0xff] }
  0x9d   :  { %1191 = vmatmul.msk.f32.gmra.mxu0 %vm133_vm1, %v34_v19  ;;  %v969_v62 = vadd.f32 %v968_v56, %v854_v49 }
  0x9e   :  { %1246 = vmatmul.msk.f32.gmra.mxu2 %vm133_vm1, %v89_v20  ;;  %1277 = vmatmul.msk.f32.gmra.mxu3 %vm133_vm1, %v120_v21  ;;  %v1714_v20 = vpop.f32.mrf.mxu1 }
  0xa1   :  { %v677_v24 = vpop.f32.mrf.mxu2  ;;  %v770_v25 = vpop.f32.mrf.mxu3 }
  0xa2   :  { %v940_v26 = vmax.f32 %v770_v25, 0.0  ;;  %v515_v27 = vpop.f32.mrf.mxu0  ;;  %v909_v33 = vmax.f32 %v677_v24, 0.0 }
  0xa3   :  { %v855_v57 = vmax.f32 %v515_v27, 0.0 }
  0xa4   :  { %v1070_v31 = vadd.f32 %v1069_v22, %v940_v26  ;;  %v61_v22 = vld [vmem:[%s1987_s0 + $0x170] sm:$0xff] }
  0xa5   :  { %1192 = vmatmul.msk.f32.gmra.mxu0 %vm133_vm1, %v35_v28  ;;  %v970_v3 = vadd.f32 %v969_v62, %v855_v57  ;;  %1218 = vmatmul.msk.f32.gmra.mxu1 %vm133_vm1, %v61_v22  ;;  %v39_v28 = vld [vmem:[%s1987_s0 + $0xc0] sm:$0xff]  ;;  %v41_v57 = vld [vmem:[%s1987_s0 + $0xd0] sm:$0xff] }
  0xa6   :  { %1247 = vmatmul.msk.f32.gmra.mxu2 %vm133_vm1, %v90_v29  ;;  %1278 = vmatmul.msk.f32.gmra.mxu3 %vm133_vm1, %v121_v30  ;;  %v94_v30 = vld [vmem:[%s1987_s0 + $0x278] sm:$0xff] }
  0xa9   :  { %v680_v34 = vpop.f32.mrf.mxu2  ;;  %v773_v35 = vpop.f32.mrf.mxu3 }
  0xaa   :  { %v910_v36 = vmax.f32 %v680_v34, 0.0  ;;  %v941_v37 = vmax.f32 %v773_v35, 0.0  ;;  %v518_v38 = vpop.f32.mrf.mxu0  ;;  %v1732_v34 = vpop.f32.mrf.mxu1 }
  0xab   :  { %v856_v63 = vmax.f32 %v518_v38, 0.0 }
  0xac   :  { %v1035_v42 = vadd.f32 %v910_v36, %v909_v33  ;;  %v1071_v43 = vadd.f32 %v1070_v31, %v941_v37  ;;  %v125_v31 = vld [vmem:[%s1987_s0 + $0x370] sm:$0xff]  ;;  %v62_v36 = vld [vmem:[%s1987_s0 + $0x178] sm:$0xff] }
  0xad   :  { %1193 = vmatmul.msk.f32.gmra.mxu0 %vm133_vm1, %v36_v39  ;;  %v971_v5 = vadd.f32 %v970_v3, %v856_v63  ;;  %1219 = vmatmul.msk.f32.gmra.mxu1 %vm133_vm1, %v62_v36  ;;  %v64_v3 = vld [vmem:[%s1987_s0 + $0x188] sm:$0xff]  ;;  %v66_v36 = vld [vmem:[%s1987_s0 + $0x198] sm:$0xff] }
  0xae   :  { %1248 = vmatmul.msk.f32.gmra.mxu2 %vm133_vm1, %v91_v40  ;;  %1279 = vmatmul.msk.f32.gmra.mxu3 %vm133_vm1, %v122_v41 }
  0xb1   :  { %v683_v50 = vpop.f32.mrf.mxu2  ;;  %v776_v51 = vpop.f32.mrf.mxu3 }
  0xb2   :  { %v911_v52 = vmax.f32 %v683_v50, 0.0  ;;  %v942_v53 = vmax.f32 %v776_v51, 0.0  ;;  %v521_v54 = vpop.f32.mrf.mxu0  ;;  %v1750_v48 = vpop.f32.mrf.mxu1  ;;  %v63_v50 = vld [vmem:[%s1987_s0 + $0x180] sm:$0xff]  ;;  %v1122_v51 = vld [vmem:[%s1989_s2 + $0x78] sm:$0xff] }
  0xb3   :  { %v857_v4 = vmax.f32 %v521_v54, 0.0  ;;  %1134 = vmatpush.msrb.mxu1 %v1122_v51 }
  0xb4   :  { %v1036_v60 = vadd.f32 %v1035_v42, %v911_v52  ;;  %v1072_v61 = vadd.f32 %v1071_v43, %v942_v53  ;;  %v40_v42 = vld [vmem:[%s1987_s0 + $0xc8] sm:$0xff] }
  0xb5   :  { %1194 = vmatmul.msk.f32.gmra.mxu0 %vm133_vm1, %v37_v55  ;;  %v972_v13 = vadd.f32 %v971_v5, %v857_v4  ;;  %1220 = vmatmul.msk.f32.gmra.mxu1 %vm133_vm1, %v63_v50 }
  0xb6   :  { %1249 = vmatmul.msk.f32.gmra.mxu2 %vm133_vm1, %v92_v58  ;;  %1280 = vmatmul.msk.f32.gmra.mxu3 %vm133_vm1, %v123_v59  ;;  %v96_v59 = vld [vmem:[%s1987_s0 + $0x288] sm:$0xff] }
  0xb9   :  { %v686_v6 = vpop.f32.mrf.mxu2  ;;  %v779_v8 = vpop.f32.mrf.mxu3 }
  0xba   :  { %v912_v9 = vmax.f32 %v686_v6, 0.0  ;;  %v943_v10 = vmax.f32 %v779_v8, 0.0  ;;  %v524_v11 = vpop.f32.mrf.mxu0  ;;  %v1771_v63 = vpop.f32.mrf.mxu1 }
  0xbb   :  { %v858_v14 = vmax.f32 %v524_v11, 0.0 }
  0xbc   :  { %v1037_v18 = vadd.f32 %v1036_v60, %v912_v9  ;;  %v1073_v19 = vadd.f32 %v1072_v61, %v943_v10  ;;  %v127_v60 = vld [vmem:[%s1987_s0 + $0x380] sm:$0xff]  ;;  %v42_v10 = vld [vmem:[%s1987_s0 + $0xd8] sm:$0xff] }
  0xbd   :  { %v973_v21 = vadd.f32 %v972_v13, %v858_v14  ;;  %1195 = vmatmul.msk.f32.gmra.mxu0 %vm133_vm1, %v38_v12  ;;  %1221 = vmatmul.msk.f32.gmra.mxu1 %vm133_vm1, %v64_v3  ;;  %v97_v12 = vld [vmem:[%s1987_s0 + $0x290] sm:$0xff]  ;;  %v128_v13 = vld [vmem:[%s1987_s0 + $0x388] sm:$0xff]  ;;  %v1119_v3 = vld [vmem:[%s1989_s2 + $0x60] sm:$0xff] }
  0xbe   :  { %1250 = vmatmul.msk.f32.gmra.mxu2 %vm133_vm1, %v93_v16  ;;  %1281 = vmatmul.msk.f32.gmra.mxu3 %vm133_vm1, %v124_v17 }
  0xc1   :  { %v689_v23 = vpop.f32.mrf.mxu2  ;;  %v782_v24 = vpop.f32.mrf.mxu3 }
  0xc2   :  { %v913_v25 = vmax.f32 %v689_v23, 0.0  ;;  %v944_v26 = vmax.f32 %v782_v24, 0.0  ;;  %v527_v27 = vpop.f32.mrf.mxu0  ;;  %v1789_v17 = vpop.f32.mrf.mxu1 }
  0xc3   :  { %v859_v29 = vmax.f32 %v527_v27, 0.0  ;;  %v43_v27 = vld [vmem:[%s1987_s0 + $0xe0] sm:$0xff] }
  0xc4   :  { %v1038_v32 = vadd.f32 %v1037_v18, %v913_v25  ;;  %v1074_v33 = vadd.f32 %v1073_v19, %v944_v26  ;;  %v1121_v19 = vld [vmem:[%s1989_s2 + $0x70] sm:$0xff] }
  0xc5   :  { %v974_v35 = vadd.f32 %v973_v21, %v859_v29  ;;  %1196 = vmatmul.msk.f32.gmra.mxu0 %vm133_vm1, %v39_v28  ;;  %v65_v21 = vld [vmem:[%s1987_s0 + $0x190] sm:$0xff]  ;;  %1135 = vmatpush.msrb.mxu1 %v1121_v19  ;;  %v98_v29 = vld [vmem:[%s1987_s0 + $0x298] sm:$0xff] }
  0xc6   :  { %1251 = vmatmul.msk.f32.gmra.mxu2 %vm133_vm1, %v94_v30  ;;  %1282 = vmatmul.msk.f32.gmra.mxu3 %vm133_vm1, %v125_v31  ;;  %v129_v30 = vld [vmem:[%s1987_s0 + $0x390] sm:$0xff] }
  0xc7   :  { %1222 = vmatmul.msk.f32.gmra.mxu1 %vm133_vm1, %v65_v21 }
  0xc9   :  { %v692_v37 = vpop.f32.mrf.mxu2  ;;  %v785_v38 = vpop.f32.mrf.mxu3 }
  0xca   :  { %v914_v39 = vmax.f32 %v692_v37, 0.0  ;;  %v945_v40 = vmax.f32 %v785_v38, 0.0  ;;  %v530_v41 = vpop.f32.mrf.mxu0  ;;  %v1120_v37 = vld [vmem:[%s1989_s2 + $0x68] sm:$0xff] }
  0xcb   :  { %v860_v43 = vmax.f32 %v530_v41, 0.0  ;;  %1136 = vmatpush.msrb.mxu1 %v1120_v37 }
  0xcc   :  { %v1039_v46 = vadd.f32 %v1038_v32, %v914_v39  ;;  %v1075_v47 = vadd.f32 %v1074_v33, %v945_v40  ;;  %v1810_v33 = vpop.f32.mrf.mxu1 }
  0xcd   :  { %v975_v49 = vadd.f32 %v974_v35, %v860_v43  ;;  %1197 = vmatmul.msk.f32.gmra.mxu0 %vm133_vm1, %v40_v42  ;;  %v44_v43 = vld [vmem:[%s1987_s0 + $0xe8] sm:$0xff]  ;;  %1137 = vmatpush.msrb.mxu1 %v1119_v3 }
  0xce   :  { %1252 = vmatmul.msk.f32.gmra.mxu2 %vm133_vm1, %v95_v44  ;;  %1283 = vmatmul.msk.f32.gmra.mxu3 %vm133_vm1, %v126_v45  ;;  %v99_v45 = vld [vmem:[%s1987_s0 + $0x2a0] sm:$0xff] }
  0xcf   :  { %1223 = vmatmul.msk.f32.gmra.mxu1 %vm133_vm1, %v66_v36 }
  0xd1   :  { %v695_v52 = vpop.f32.mrf.mxu2  ;;  %v788_v53 = vpop.f32.mrf.mxu3 }
  0xd2   :  { %v915_v54 = vmax.f32 %v695_v52, 0.0  ;;  %v946_v55 = vmax.f32 %v788_v53, 0.0  ;;  %v533_v56 = vpop.f32.mrf.mxu0  ;;  %v67_v52 = vld [vmem:[%s1987_s0 + $0x1a0] sm:$0xff] }
  0xd3   :  { %v861_v58 = vmax.f32 %v533_v56, 0.0 }
  0xd4   :  { %v1040_v61 = vadd.f32 %v1039_v46, %v915_v54  ;;  %v1076_v62 = vadd.f32 %v1075_v47, %v946_v55  ;;  %v130_v46 = vld [vmem:[%s1987_s0 + $0x398] sm:$0xff]  ;;  %v1831_v50 = vpop.f32.mrf.mxu1 }
  0xd5   :  { %v976_v2 = vadd.f32 %v975_v49, %v861_v58  ;;  %1198 = vmatmul.msk.f32.gmra.mxu0 %vm133_vm1, %v41_v57 }
  0xd6   :  { %1253 = vmatmul.msk.f32.gmra.mxu2 %vm133_vm1, %v96_v59  ;;  %1284 = vmatmul.msk.f32.gmra.mxu3 %vm133_vm1, %v127_v60  ;;  %v100_v59 = vld [vmem:[%s1987_s0 + $0x2a8] sm:$0xff] }
  0xd7   :  { %1224 = vmatmul.msk.f32.gmra.mxu1 %vm133_vm1, %v67_v52 }
  0xd9   :  { %v698_v4 = vpop.f32.mrf.mxu2  ;;  %v791_v5 = vpop.f32.mrf.mxu3 }
  0xda   :  { %v916_v6 = vmax.f32 %v698_v4, 0.0  ;;  %v947_v8 = vmax.f32 %v791_v5, 0.0  ;;  %v536_v9 = vpop.f32.mrf.mxu0  ;;  %v68_v4 = vld [vmem:[%s1987_s0 + $0x1a8] sm:$0xff] }
  0xdb   :  { %v862_v11 = vmax.f32 %v536_v9, 0.0 }
  0xdc   :  { %v1041_v14 = vadd.f32 %v1040_v61, %v916_v6  ;;  %v1077_v16 = vadd.f32 %v1076_v62, %v947_v8  ;;  %v1843_v62 = vpop.f32.mrf.mxu1 }
  0xdd   :  { %v977_v18 = vadd.f32 %v976_v2, %v862_v11  ;;  %1199 = vmatmul.msk.f32.gmra.mxu0 %vm133_vm1, %v42_v10 }
  0xde   :  { %1254 = vmatmul.msk.f32.gmra.mxu2 %vm133_vm1, %v97_v12  ;;  %1285 = vmatmul.msk.f32.gmra.mxu3 %vm133_vm1, %v128_v13 }
  0xdf   :  { %1225 = vmatmul.msk.f32.gmra.mxu1 %vm133_vm1, %v68_v4  ;;  %v1116_v4 = vld [vmem:[%s1989_s2 + $0x48] sm:$0xff] }
  0xe1   :  { %v701_v22 = vpop.f32.mrf.mxu2  ;;  %v794_v23 = vpop.f32.mrf.mxu3 }
  0xe2   :  { %v917_v24 = vmax.f32 %v701_v22, 0.0  ;;  %v948_v25 = vmax.f32 %v794_v23, 0.0  ;;  %v539_v26 = vpop.f32.mrf.mxu0 }
  0xe3   :  { %v863_v28 = vmax.f32 %v539_v26, 0.0 }
  0xe4   :  { %v1042_v31 = vadd.f32 %v1041_v14, %v917_v24  ;;  %v1078_v32 = vadd.f32 %v1077_v16, %v948_v25  ;;  %v1853_v14 = vpop.f32.mrf.mxu1 }
  0xe5   :  { %v978_v35 = vadd.f32 %v977_v18, %v863_v28  ;;  %1200 = vmatmul.msk.f32.gmra.mxu0 %vm133_vm1, %v43_v27  ;;  %v69_v18 = vld [vmem:[%s1987_s0 + $0x1b0] sm:$0xff]  ;;  %v1118_v28 = vld [vmem:[%s1989_s2 + $0x58] sm:$0xff] }
  0xe6   :  { %1255 = vmatmul.msk.f32.gmra.mxu2 %vm133_vm1, %v98_v29  ;;  %1286 = vmatmul.msk.f32.gmra.mxu3 %vm133_vm1, %v129_v30 }
  0xe7   :  { %1226 = vmatmul.msk.f32.gmra.mxu1 %vm133_vm1, %v69_v18 }
  0xe8   :  { %1138 = vmatpush.msrb.mxu1 %v1118_v28 }
  0xe9   :  { %v704_v38 = vpop.f32.mrf.mxu2  ;;  %v797_v39 = vpop.f32.mrf.mxu3 }
  0xea   :  { %v918_v40 = vmax.f32 %v704_v38, 0.0  ;;  %v949_v41 = vmax.f32 %v797_v39, 0.0  ;;  %v542_v42 = vpop.f32.mrf.mxu0 }
  0xeb   :  { %v864_v44 = vmax.f32 %v542_v42, 0.0 }
  0xec   :  { %v1043_v47 = vadd.f32 %v1042_v31, %v918_v40  ;;  %v1079_v49 = vadd.f32 %v1078_v32, %v949_v41  ;;  %v1862_v29 = vpop.f32.mrf.mxu1 }
  0xed   :  { %v979_v51 = vadd.f32 %v978_v35, %v864_v44  ;;  %1201 = vmatmul.msk.f32.gmra.mxu0 %vm133_vm1, %v44_v43  ;;  %v1117_v43 = vld [vmem:[%s1989_s2 + $0x50] sm:$0xff] }
  0xee   :  { %1256 = vmatmul.msk.f32.gmra.mxu2 %vm133_vm1, %v99_v45  ;;  %1287 = vmatmul.msk.f32.gmra.mxu3 %vm133_vm1, %v130_v46 }
  0xef   :  { %1139 = vmatpush.msrb.mxu1 %v1117_v43 }
  0xf1   :  { %v707_v53 = vpop.f32.mrf.mxu2  ;;  %v800_v54 = vpop.f32.mrf.mxu3  ;;  %1140 = vmatpush.msrb.mxu1 %v1116_v4 }
  0xf2   :  { %v919_v55 = vmax.f32 %v707_v53, 0.0  ;;  %v950_v56 = vmax.f32 %v800_v54, 0.0  ;;  %v545_v57 = vpop.f32.mrf.mxu0 }
  0xf3   :  { %v865_v58 = vmax.f32 %v545_v57, 0.0 }
  0xf4   :  { %v1044_v60 = vadd.f32 %v1043_v47, %v919_v55  ;;  %v1080_v61 = vadd.f32 %v1079_v49, %v950_v56  ;;  %v1864_v41 = vpop.f32.mrf.mxu1 }
  0xf5   :  { %v980_v2 = vadd.f32 %v979_v51, %v865_v58 }
  0xf6   :  { %1257 = vmatmul.msk.f32.gmra.mxu2 %vm133_vm1, %v100_v59 }
  0xf9   :  { %v710_v5 = vpop.f32.mrf.mxu2  ;;  %v803_v6 = vpop.f32.mrf.mxu3 }
  0xfa   :  { %v920_v8 = vmax.f32 %v710_v5, 0.0  ;;  %v951_v9 = vmax.f32 %v803_v6, 0.0  ;;  %v548_v10 = vpop.f32.mrf.mxu0 }
  0xfb   :  { %v866_v11 = vmax.f32 %v548_v10, 0.0 }
  0xfc   :  { %v1045_v12 = vadd.f32 %v1044_v60, %v920_v8  ;;  %v1081_v13 = vadd.f32 %v1080_v61, %v951_v9  ;;  %v1869_v54 = vpop.f32.mrf.mxu1 }
  0xfd   :  { %v981_v16 = vadd.f32 %v980_v2, %v866_v11 }
 0x101   :  { %v713_v19 = vpop.f32.mrf.mxu2  ;;  %v806_v21 = vpop.f32.mrf.mxu3 }
 0x102   :  { %v921_v22 = vmax.f32 %v713_v19, 0.0  ;;  %v952_v23 = vmax.f32 %v806_v21, 0.0  ;;  %v551_v24 = vpop.f32.mrf.mxu0 }
 0x103   :  { %v867_v25 = vmax.f32 %v551_v24, 0.0 }
 0x104   :  { %v1046_v26 = vadd.f32 %v1045_v12, %v921_v22  ;;  %v1082_v27 = vadd.f32 %v1081_v13, %v952_v23  ;;  %v1876_v6 = vpop.f32.mrf.mxu1 }
 0x105   :  { %v982_v30 = vadd.f32 %v981_v16, %v867_v25  ;;  %v1115_v16 = vld [vmem:[%s1989_s2 + $0x40] sm:$0xff] }
 0x106   :  { %1141 = vmatpush.msrb.mxu1 %v1115_v16 }
 0x109   :  { %v716_v31 = vpop.f32.mrf.mxu2  ;;  %v809_v32 = vpop.f32.mrf.mxu3 }
 0x10a   :  { %v922_v35 = vmax.f32 %v716_v31, 0.0  ;;  %v953_v36 = vmax.f32 %v809_v32, 0.0  ;;  %v554_v37 = vpop.f32.mrf.mxu0  ;;  %v1114_v31 = vld [vmem:[%s1989_s2 + $0x38] sm:$0xff] }
 0x10b   :  { %v868_v38 = vmax.f32 %v554_v37, 0.0  ;;  %1142 = vmatpush.msrb.mxu1 %v1114_v31 }
 0x10c   :  { %v1047_v39 = vadd.f32 %v1046_v26, %v922_v35  ;;  %v1083_v40 = vadd.f32 %v1082_v27, %v953_v36  ;;  %v1881_v18 = vpop.f32.mrf.mxu1 }
 0x10d   :  { %v983_v42 = vadd.f32 %v982_v30, %v868_v38 }
 0x111   :  { %v719_v44 = vpop.f32.mrf.mxu2  ;;  %v812_v45 = vpop.f32.mrf.mxu3 }
 0x112   :  { %v923_v46 = vmax.f32 %v719_v44, 0.0  ;;  %v954_v47 = vmax.f32 %v812_v45, 0.0  ;;  %v557_v49 = vpop.f32.mrf.mxu0 }
 0x113   :  { %v869_v51 = vmax.f32 %v557_v49, 0.0 }
 0x114   :  { %v1048_v52 = vadd.f32 %v1047_v39, %v923_v46  ;;  %v1084_v53 = vadd.f32 %v1083_v40, %v954_v47  ;;  %v1885_v27 = vpop.f32.mrf.mxu1  ;;  %v1113_v40 = vld [vmem:[%s1989_s2 + $0x30] sm:$0xff] }
 0x115   :  { %v984_v55 = vadd.f32 %v983_v42, %v869_v51  ;;  %1143 = vmatpush.msrb.mxu1 %v1113_v40 }
 0x119   :  { %v722_v56 = vpop.f32.mrf.mxu2  ;;  %v815_v57 = vpop.f32.mrf.mxu3 }
 0x11a   :  { %v924_v58 = vmax.f32 %v722_v56, 0.0  ;;  %v955_v59 = vmax.f32 %v815_v57, 0.0  ;;  %v560_v60 = vpop.f32.mrf.mxu0 }
 0x11b   :  { %v870_v61 = vmax.f32 %v560_v60, 0.0 }
 0x11c   :  { %v1049_v2 = vadd.f32 %v1048_v52, %v924_v58  ;;  %v1871_v3 = vadd.f32 %v1084_v53, %v955_v59  ;;  %v1892_v38 = vpop.f32.mrf.mxu1 }
 0x11d   :  { %v985_v5 = vadd.f32 %v984_v55, %v870_v61 }
 0x121   :  { %v725_v8 = vpop.f32.mrf.mxu2  ;;  %v1883_v23 = vpop.f32.mrf.mxu3 }
 0x122   :  { %v925_v9 = vmax.f32 %v725_v8, 0.0  ;;  %v563_v10 = vpop.f32.mrf.mxu0 }
 0x123   :  { %v871_v11 = vmax.f32 %v563_v10, 0.0 }
 0x124   :  { %v1050_v12 = vadd.f32 %v1049_v2, %v925_v9  ;;  %v1899_v47 = vpop.f32.mrf.mxu1 }
 0x125   :  { %v986_v13 = vadd.f32 %v985_v5, %v871_v11 }
 0x129   :  { %v728_v19 = vpop.f32.mrf.mxu2  ;;  %v1890_v32 = vpop.f32.mrf.mxu3 }
 0x12a   :  { %v566_v21 = vpop.f32.mrf.mxu0  ;;  %v926_v16 = vmax.f32 %v728_v19, 0.0 }
 0x12b   :  { %v872_v22 = vmax.f32 %v566_v21, 0.0 }
 0x12c   :  { %v1903_v56 = vpop.f32.mrf.mxu1 }
 0x12d   :  { %v987_v24 = vadd.f32 %v986_v13, %v872_v22 }
 0x131   :  { %v731_v25 = vpop.f32.mrf.mxu2  ;;  %v1897_v42 = vpop.f32.mrf.mxu3 }
 0x132   :  { %v569_v26 = vpop.f32.mrf.mxu0  ;;  %v927_v22 = vmax.f32 %v731_v25, 0.0 }
 0x133   :  { %v873_v28 = vmax.f32 %v569_v26, 0.0 }
 0x134   :  { %v1907_v5 = vpop.f32.mrf.mxu1 }
 0x135   :  { %v988_v30 = vadd.f32 %v987_v24, %v873_v28  ;;  %v1051_v24 = vadd.f32 %v1050_v12, %v926_v16  ;;  %v883_v12 = vmax.f32 %v1750_v48, 0.0  ;;  %v1111_v48 = vld [vmem:[%s1989_s2 + $0x20] sm:$0xff]  ;;  %v886_v16 = vmax.f32 %v1810_v33, 0.0  ;;  %v1109_v33 = vld [vmem:[%s1989_s2 + $0x10] sm:$0xff] }
 0x137   :  { %v1052_v31 = vadd.f32 %v1051_v24, %v927_v22 }
 0x139   :  { %v734_v35 = vpop.f32.mrf.mxu2  ;;  %v1901_v51 = vpop.f32.mrf.mxu3 }
 0x13a   :  { %v572_v36 = vpop.f32.mrf.mxu0  ;;  %v928_v26 = vmax.f32 %v734_v35, 0.0 }
 0x13b   :  { %v874_v37 = vmax.f32 %v572_v36, 0.0 }
 0x13c   :  { %v1915_v21 = vpop.f32.mrf.mxu1 }
 0x13d   :  { %v989_v39 = vadd.f32 %v988_v30, %v874_v37 }
 0x141   :  { %v737_v43 = vpop.f32.mrf.mxu2  ;;  %v1905_v60 = vpop.f32.mrf.mxu3 }
 0x142   :  { %v575_v44 = vpop.f32.mrf.mxu0  ;;  %v929_v36 = vmax.f32 %v737_v43, 0.0  ;;  %v884_v43 = vmax.f32 %v1771_v63, 0.0 }
 0x143   :  { %v875_v45 = vmax.f32 %v575_v44, 0.0  ;;  %v1053_v44 = vadd.f32 %v1052_v31, %v928_v26  ;;  %v887_v31 = vmax.f32 %v1831_v50, 0.0  ;;  %v889_v50 = vmax.f32 %v1853_v14, 0.0 }
 0x145   :  { %v990_v46 = vadd.f32 %v989_v39, %v875_v45  ;;  %v881_v39 = vmax.f32 %v1714_v20, 0.0  ;;  %v1054_v19 = vadd.f32 %v1053_v44, %v929_v36  ;;  %v1112_v20 = vld [vmem:[%s1989_s2 + $0x28] sm:$0xff] }
 0x146   :  { %1144 = vmatpush.msrb.mxu1 %v1112_v20  ;;  %v892_v20 = vmax.f32 %v1869_v54, 0.0  ;;  %v895_v54 = vmax.f32 %v1885_v27, 0.0 }
 0x148   :  { %1145 = vmatpush.msrb.mxu1 %v1111_v48 }
 0x149   :  { %v740_v49 = vpop.f32.mrf.mxu2  ;;  %v1911_v10 = vpop.f32.mrf.mxu3 }
 0x14a   :  { %v578_v52 = vpop.f32.mrf.mxu0  ;;  %v930_v45 = vmax.f32 %v740_v49, 0.0 }
 0x14b   :  { %v876_v53 = vmax.f32 %v578_v52, 0.0 }
 0x14c   :  { %v1055_v35 = vadd.f32 %v1054_v19, %v930_v45 }
 0x14d   :  { %v991_v55 = vadd.f32 %v990_v46, %v876_v53  ;;  %v882_v46 = vmax.f32 %v1732_v34, 0.0 }
 0x151   :  { %v743_v57 = vpop.f32.mrf.mxu2  ;;  %v1917_v28 = vpop.f32.mrf.mxu3 }
 0x152   :  { %v581_v58 = vpop.f32.mrf.mxu0  ;;  %v931_v53 = vmax.f32 %v743_v57, 0.0  ;;  %v885_v57 = vmax.f32 %v1789_v17, 0.0  ;;  %v1110_v17 = vld [vmem:[%s1989_s2 + $0x18] sm:$0xff] }
 0x153   :  { %v877_v59 = vmax.f32 %v581_v58, 0.0  ;;  %1146 = vmatpush.msrb.mxu1 %v1110_v17 }
 0x155   :  { %v992_v61 = vadd.f32 %v991_v55, %v877_v59  ;;  %v1921_v55 = vpop.f32.mrf.mxu1  ;;  %1147 = vmatpush.msrb.mxu1 %v1109_v33 }
 0x159   :  { %v746_v2 = vpop.f32.mrf.mxu2  ;;  %v1928_v34 = vpop.f32.mrf.mxu3 }
 0x15a   :  { %v584_v4 = vpop.f32.mrf.mxu0  ;;  %v932_v58 = vmax.f32 %v746_v2, 0.0 }
 0x15b   :  { %v878_v8 = vmax.f32 %v584_v4, 0.0 }
 0x15d   :  { %v1909_v9 = vadd.f32 %v992_v61, %v878_v8  ;;  %v1056_v61 = vadd.f32 %v1055_v35, %v931_v53  ;;  %v956_v35 = vmax.f32 %v1883_v23, 0.0  ;;  %v894_v23 = vmax.f32 %v1881_v18, 0.0 }
 0x15f   :  { %v1057_v2 = vadd.f32 %v1056_v61, %v932_v58  ;;  %v891_v58 = vmax.f32 %v1864_v41, 0.0  ;;  %v958_v61 = vmax.f32 %v1897_v42, 0.0  ;;  %v896_v42 = vmax.f32 %v1892_v38, 0.0  ;;  %v1107_v38 = vld [vmem:[%s1989_s2] sm:$0xff] }
 0x161   :  { %v749_v11 = vpop.f32.mrf.mxu2  ;;  %v842_v19 = vpop.f32.mrf.mxu3 }
 0x162   :  { %v1913_v13 = vpop.f32.mrf.mxu0  ;;  %v933_v4 = vmax.f32 %v749_v11, 0.0  ;;  %v964_v17 = vmax.f32 %v842_v19, 0.0 }
 0x164   :  { %v1058_v24 = vadd.f32 %v1057_v2, %v933_v4 }
 0x169   :  { %v752_v30 = vpop.f32.mrf.mxu2  ;;  %v845_v48 = vpop.f32.mrf.mxu3 }
 0x16a   :  { %v590_v37 = vpop.f32.mrf.mxu0  ;;  %v934_v63 = vmax.f32 %v752_v30, 0.0 }
 0x16b   :  { %v880_v40 = vmax.f32 %v590_v37, 0.0  ;;  %v1939_v37 = vpop.f32.mrf.mxu1 }
 0x16c   :  { %v1059_v11 = vadd.f32 %v1058_v24, %v934_v63  ;;  %v962_v24 = vmax.f32 %v1917_v28, 0.0 }
 0x16d   :  { %v1001_v52 = vadd.f32 %v881_v39, %v880_v40  ;;  %v888_v39 = vmax.f32 %v1843_v62, 0.0 }
 0x16f   :  { %v1002_v25 = vadd.f32 %v1001_v52, %v882_v46  ;;  %v937_v52 = vmax.f32 %v1596_v1, 0.0  ;;  %v1086_v1 = vadd.f32 %v1871_v3, %v956_v35  ;;  %v961_v3 = vmax.f32 %v1911_v10, 0.0  ;;  %v1108_v10 = vld [vmem:[%s1989_s2 + $0x8] sm:$0xff]  ;;  %s1321_s2 = smov [#allocation2]  }
 0x170   :  { %1148 = vmatpush.msrb.mxu1 %v1108_v10  ;;  %s1160_s26 = sshll.u32 %s1321_s2, 4  ;;  %s1161_s26 = int_to_ptr.vmem [resolvable:$true] %s1160_s26 }
 0x171   :  { %v1003_v59 = vadd.f32 %v1002_v25, %v883_v12  ;;  %v755_v49 = vpop.f32.mrf.mxu2  ;;  %v890_v12 = vmax.f32 %v1862_v29, 0.0  ;;  %v893_v29 = vmax.f32 %v1876_v6, 0.0 }
 0x172   :  { %v935_v26 = vmax.f32 %v755_v49, 0.0  ;;  %1149 = vmatpush.msrb.mxu1 %v1107_v38 }
 0x173   :  { %v1004_v8 = vadd.f32 %v1003_v59, %v884_v43  ;;  %v957_v59 = vmax.f32 %v1890_v32, 0.0  ;;  %v659_v49 = vpop.f32.mrf.mxu1  ;;  %v960_v32 = vmax.f32 %v1905_v60, 0.0  ;;  %v898_v60 = vmax.f32 %v1903_v56, 0.0 }
 0x174   :  { %v1060_v44 = vadd.f32 %v1059_v11, %v935_v26  ;;  %v903_v35 = vmax.f32 %v659_v49, 0.0  ;;  %v908_v49 = vmax.f32 %v1636_v15, 0.0 }
 0x175   :  { %v1005_v22 = vadd.f32 %v1004_v8, %v885_v57  ;;  %v1087_v57 = vadd.f32 %v1086_v1, %v957_v59  ;;  %v959_v8 = vmax.f32 %v1901_v51, 0.0  ;;  %v897_v51 = vmax.f32 %v1899_v47, 0.0 }
 0x176   :  { %v899_v47 = vmax.f32 %v1907_v5, 0.0  ;;  %v902_v5 = vmax.f32 %v1939_v37, 0.0  ;;  %v907_v37 = vmax.f32 %v1616_v7, 0.0 }
 0x177   :  { %v1006_v36 = vadd.f32 %v1005_v22, %v886_v16  ;;  %v1088_v2 = vadd.f32 %v1087_v57, %v958_v61 }
 0x179   :  { %v1007_v30 = vadd.f32 %v1006_v36, %v887_v31  ;;  %v758_v40 = vpop.f32.mrf.mxu2  ;;  %v1089_v16 = vadd.f32 %v1088_v2, %v959_v8  ;;  %v963_v36 = vmax.f32 %v1928_v34, 0.0  ;;  %v900_v34 = vmax.f32 %v1915_v21, 0.0 }
 0x17a   :  { %v936_v45 = vmax.f32 %v758_v40, 0.0  ;;  %v965_v40 = vmax.f32 %v845_v48, 0.0 }
 0x17b   :  { %v1008_v46 = vadd.f32 %v1007_v30, %v888_v39  ;;  %v1090_v22 = vadd.f32 %v1089_v16, %v960_v32  ;;  %v662_v26 = vpop.f32.mrf.mxu1  ;;  %v848_v39 = vpop.f32.mrf.mxu3  ;;  %v879_v30 = vmax.f32 %v1913_v13, 0.0 }
 0x17c   :  { %v1061_v53 = vadd.f32 %v1060_v44, %v936_v45  ;;  %v966_v45 = vmax.f32 %v848_v39, 0.0  ;;  %v904_v13 = vmax.f32 %v662_v26, 0.0 }
 0x17d   :  { %v1009_v25 = vadd.f32 %v1008_v46, %v889_v50  ;;  %v1091_v31 = vadd.f32 %v1090_v22, %v961_v3  ;;  %v901_v46 = vmax.f32 %v1921_v55, 0.0  ;;  %v906_v55 = vmax.f32 %v1594_v0, 0.0 }
 0x17e   :  { %v1948_v62 = vadd.f32 %v1061_v53, %v937_v52  ;;  %v994_v52 = vadd.f32 %v1909_v9, %v879_v30 }
 0x17f   :  { %v1010_v43 = vadd.f32 %v1009_v25, %v890_v12  ;;  %v1092_v28 = vadd.f32 %v1091_v31, %v962_v24 }
 0x181   :  { %v1011_v14 = vadd.f32 %v1010_v43, %v891_v58  ;;  %v1093_v56 = vadd.f32 %v1092_v28, %v963_v36  ;;  %v995_v58 = vrot.slane %v994_v52, 4 }
 0x183   :  { %v1012_v4 = vadd.f32 %v1011_v14, %v892_v20  ;;  %v1094_v44 = vadd.f32 %v1093_v56, %v964_v17  ;;  %v665_v12 = vpop.f32.mrf.mxu1  ;;  %v1063_v20 = vrot.slane %v1948_v62, 4  ;;  %v996_v61 = vadd.f32 %v995_v58, %v994_v52 }
 0x184   :  { %v905_v59 = vmax.f32 %v665_v12, 0.0 }
 0x185   :  { %v1013_v41 = vadd.f32 %v1012_v4, %v893_v29  ;;  %v1095_v19 = vadd.f32 %v1094_v44, %v965_v40  ;;  %v1064_v29 = vadd.f32 %v1063_v20, %v1948_v62  ;;  %v997_v8 = vrot.slane %v996_v61, 2 }
 0x187   :  { %v1014_v63 = vadd.f32 %v1013_v41, %v894_v23  ;;  %v1096_v25 = vadd.f32 %v1095_v19, %v966_v45  ;;  %v1065_v41 = vrot.slane %v1064_v29, 2  ;;  %v998_v32 = vadd.f32 %v997_v8, %v996_v61 }
 0x189   :  { %v1015_v6 = vadd.f32 %v1014_v63, %v895_v54  ;;  %v1097_v14 = vrot.slane %v1096_v25, 4  ;;  %v1066_v63 = vadd.f32 %v1065_v41, %v1064_v29  ;;  %v999_v3 = vrot.slane %v998_v32, 1 }
 0x18b   :  { %v1016_v18 = vadd.f32 %v1015_v6, %v896_v42  ;;  %v1098_v4 = vadd.f32 %v1097_v14, %v1096_v25  ;;  %v1067_v6 = vrot.slane %v1066_v63, 1  ;;  %v1000_v7 = vadd.f32 %v999_v3, %v998_v32 }
 0x18d   :  { %v1017_v27 = vadd.f32 %v1016_v18, %v897_v51  ;;  %v1099_v48 = vrot.slane %v1098_v4, 2  ;;  %v1068_v51 = vadd.f32 %v1067_v6, %v1066_v63  ;;  %v1103_v26 = vmul.f32 0.0044444446, %v1000_v7 }
 0x18f   :  { %v1018_v11 = vadd.f32 %v1017_v27, %v898_v60  ;;  %v1100_v16 = vadd.f32 %v1099_v48, %v1098_v4  ;;  %v1105_v36 = vmul.f32 0.0044444446, %v1068_v51 }
 0x191   :  { %v1019_v33 = vadd.f32 %v1018_v11, %v899_v47  ;;  %v1101_v62 = vrot.slane %v1100_v16, 1 }
 0x193   :  { %v1020_v50 = vadd.f32 %v1019_v33, %v900_v34  ;;  %v1102_v18 = vadd.f32 %v1101_v62, %v1100_v16 }
 0x195   :  { %v1021_v53 = vadd.f32 %v1020_v50, %v901_v46  ;;  %v1106_v60 = vmul.f32 0.0044444446, %v1102_v18 }
 0x197   :  { %v1022_v21 = vadd.f32 %v1021_v53, %v902_v5 }
 0x199   :  { %v1023_v43 = vadd.f32 %v1022_v21, %v903_v35 }
 0x19b   :  { %v1024_v1 = vadd.f32 %v1023_v43, %v904_v13 }
 0x19d   :  { %v1025_v9 = vadd.f32 %v1024_v1, %v905_v59 }
 0x19f   :  { %v1026_v57 = vadd.f32 %v1025_v9, %v906_v55 }
 0x1a1   :  { %v1027_v23 = vadd.f32 %v1026_v57, %v907_v37 }
 0x1a3   :  { %v1028_v2 = vadd.f32 %v1027_v23, %v908_v49 }
 0x1a5   :  { %v1029_v54 = vrot.slane %v1028_v2, 4 }
 0x1a7   :  { %v1030_v0 = vadd.f32 %v1029_v54, %v1028_v2 }
 0x1a9   :  { %v1031_v42 = vrot.slane %v1030_v0, 2 }
 0x1ab   :  { %v1032_v22 = vadd.f32 %v1031_v42, %v1030_v0 }
 0x1ad   :  { %v1033_v24 = vrot.slane %v1032_v22, 1 }
 0x1af   :  { %v1034_v15 = vadd.f32 %v1033_v24, %v1032_v22 }
 0x1b1   :  { %v1104_v31 = vmul.f32 0.0044444446, %v1034_v15 }
 0x1b3   :  { %v1128_v27 = vsel %vm1127_vm2, %v1104_v31, %v1103_v26 }
 0x1b4   :  { %v1130_v10 = vsel %vm1129_vm3, %v1105_v36, %v1128_v27 }
 0x1b5   :  { %v1132_v38 = vsel %vm1131_vm4, %v1106_v60, %v1130_v10 }
 0x1b6   :  { %1150 = vmatmul.f32.vlgmr.msrb.gmra.mxu1 %v1132_v38 }
 0x233   :  { %v1151_v28 = vpop.f32.mrf.mxu1 }
 0x234   :  { %1154 = vst [vmem:[#allocation2] sm:$0xf] %v1151_v28 }
 0x235   :  { %1165 = dma.vmem_to_hbm [thread:$0]  %s1161_s26, 64, %s1163_s29, [#allocation3]  }
 0x236   :  { %1319 = dma.done.wait [#allocation3], 64  }
 0x237   :  { %1320 = vsyncadd [#allocation3], 4294967232 }
 0x238   :  { %1170 = vsyncpa [#allocation3], 1 }

</bundles_post_ra>
